<compile_context>
chip_gen: v7x
topology: tpu7x:2x2x1
jax: 0.10.0
libtpu: 0.0.40
codegen_flags: <defaults>
</compile_context>

<pallas_src>
import functools

import jax
import jax.numpy as jnp
from jax import lax
from jax.experimental import pallas as pl
from jax.experimental.pallas import tpu as pltpu

_LANES = 128


def _channel_attention_kernel(x_ref, w1t_ref, w2t_ref, o_ref, sum_acc, max_acc,
                              *, hw_true, hw_tile, n_tile, needs_mask):
    """x_ref: (n_tile, C, hw_tile); w1t_ref: (C, C_hid); w2t_ref: (C_hid, C);
    o_ref: (n_tile, C); sum_acc/max_acc: (n_tile, C, 128) f32 scratch."""
    h = pl.program_id(1)
    num_h = pl.num_programs(1)

    # --- init accumulators on the first reduction step ----------------------
    @pl.when(h == 0)
    def _init():
        sum_acc[...] = jnp.zeros_like(sum_acc)
        max_acc[...] = jnp.full_like(max_acc, -jnp.inf)

    # --- streaming spatial reduction: pure VPU accumulation -----------------
    x = x_ref[...]                                   # (n_tile, C, hw_tile)
    s = sum_acc[...]
    m = max_acc[...]
    n_chunks = hw_tile // _LANES
    for j in range(n_chunks):                        # static, lane-aligned slices
        chunk = x[:, :, j * _LANES:(j + 1) * _LANES].astype(jnp.float32)
        # Zero padding contributes 0 to the sum -> no mask needed for the sum.
        s = s + chunk
        if needs_mask:
            # Exclude spatial padding from the max (pad -> -inf).
            gidx = (h * hw_tile + j * _LANES
                    + lax.broadcasted_iota(jnp.int32, chunk.shape, 2))
            chunk = jnp.where(gidx < hw_true, chunk, -jnp.inf)
        m = jnp.maximum(m, chunk)
    sum_acc[...] = s
    max_acc[...] = m

    # --- finalize once: cross-lane reduce, matmuls, sigmoid, store ----------
    @pl.when(h == num_h - 1)
    def _finalize():
        avg = jnp.sum(sum_acc[...], axis=-1) * (1.0 / hw_true)   # (n_tile, C)
        mx = jnp.max(max_acc[...], axis=-1)                      # (n_tile, C)
        pooled = jnp.concatenate([avg, mx], axis=0)              # (2*n_tile, C)
        hid = jnp.dot(pooled, w1t_ref[...],
                      preferred_element_type=jnp.float32)        # (2*n_tile, C_hid)
        hid = jnp.maximum(hid, 0.0)                              # ReLU
        y = jnp.dot(hid, w2t_ref[...],
                    preferred_element_type=jnp.float32)          # (2*n_tile, C)
        out = y[:n_tile] + y[n_tile:]
        o_ref[...] = (1.0 / (1.0 + jnp.exp(-out))).astype(o_ref.dtype)


def channel_attention(x, w1, w2, *, hw_tile=None, x_block_budget_bytes=8 << 20):
    """x: (N, C, H, W). w1: (C_hid, C) [conv1 1x1 weight squeezed],
    w2: (C, C_hid) [conv2 1x1 weight squeezed]. Returns (N, C, 1, 1) f32."""
    N, C, H, W = x.shape
    HW = H * W
    C_hid = w1.shape[0]

    # Keep bf16 inputs as bf16 (halves HBM bytes); everything else -> f32.
    xdt = x.dtype if x.dtype in (jnp.bfloat16, jnp.float32) else jnp.float32
    x3 = x.reshape(N, C, HW).astype(xdt)
    bpe = jnp.dtype(xdt).itemsize

    # --- tile sizing ---------------------------------------------------------
    n_tile = N if N <= 8 else 8
    n_pad = pl.cdiv(N, n_tile) * n_tile
    hw_pad = pl.cdiv(HW, _LANES) * _LANES
    if hw_tile is None:
        # Largest multiple of 128 lanes such that one x block stays under budget
        # (budget chosen so 2x double-buffered blocks + scratch fit v7x VMEM).
        lanes_budget = max(1, x_block_budget_bytes // (n_tile * C * bpe * _LANES))
        hw_tile = int(min(hw_pad, lanes_budget * _LANES))
    hw_tile = max(_LANES, (int(hw_tile) // _LANES) * _LANES)
    hw_pad = pl.cdiv(hw_pad, hw_tile) * hw_tile
    needs_mask = hw_pad != HW

    # --- pad inputs so blocks tile exactly (zeros; masked out of the max) ----
    if (hw_pad - HW) or (n_pad - N):
        x3 = jnp.pad(x3, ((0, n_pad - N), (0, 0), (0, hw_pad - HW)))

    w1t = jnp.transpose(w1).astype(jnp.float32)      # (C, C_hid)
    w2t = jnp.transpose(w2).astype(jnp.float32)      # (C_hid, C)

    grid = (n_pad // n_tile, hw_pad // hw_tile)

    kernel = functools.partial(
        _channel_attention_kernel,
        hw_true=HW, hw_tile=hw_tile, n_tile=n_tile, needs_mask=needs_mask)

    cost = pl.CostEstimate(
        flops=2 * N * C * HW + 8 * N * C * C_hid,
        transcendentals=N * C,
        bytes_accessed=int(x3.size) * bpe + (int(w1.size) + int(w2.size)) * 4
                       + n_pad * C * 4,
    )

    out = pl.pallas_call(
        kernel,
        out_shape=jax.ShapeDtypeStruct((n_pad, C), jnp.float32),
        grid=grid,
        in_specs=[
            pl.BlockSpec((n_tile, C, hw_tile), lambda n, h: (n, 0, h)),
            pl.BlockSpec((C, C_hid), lambda n, h: (0, 0)),   # weights: resident
            pl.BlockSpec((C_hid, C), lambda n, h: (0, 0)),   # weights: resident
        ],
        out_specs=pl.BlockSpec((n_tile, C), lambda n, h: (n, 0)),
        scratch_shapes=[
            pltpu.VMEM((n_tile, C, _LANES), jnp.float32),    # running sum
            pltpu.VMEM((n_tile, C, _LANES), jnp.float32),    # running max
        ],
        compiler_params=pltpu.CompilerParams(
            dimension_semantics=("parallel", "arbitrary"),
            vmem_limit_bytes=48 * 1024 * 1024,
        ),
        cost_estimate=cost,
    )(x3, w1t, w2t)

    return out[:N].reshape(N, C, 1, 1)


def channel_attention_ref(x, w1, w2):
    """Pure-JAX reference matching the PyTorch module."""
    avg = jnp.mean(x, axis=(2, 3))                  # (N, C)
    mx = jnp.max(x, axis=(2, 3))                    # (N, C)

    def fc(v):
        h = jnp.maximum(v @ w1.T, 0.0)
        return h @ w2.T

    return jax.nn.sigmoid(fc(avg) + fc(mx))[:, :, None, None]


if __name__ == "__main__":
    # Small shapes consistent with the module: ratio=16 requires C >= 16.
    # H = W = 18 -> HW = 324 (not a multiple of 128) so the padded/masked
    # streaming-reduction path is exercised.
    N, C, H, W = 2, 32, 18, 18
    ratio = 16
    C_hid = C // ratio

    key = jax.random.PRNGKey(0)
    kx, k1, k2 = jax.random.split(key, 3)

    x = jax.random.normal(kx, (N, C, H, W), dtype=jnp.float32)
    # Deterministic synthetic weights (shapes from nn.Conv2d(C, C//r, 1) / (C//r, C, 1)).
    w1 = jax.random.normal(k1, (C_hid, C), dtype=jnp.float32) * (1.0 / jnp.sqrt(C))
    w2 = jax.random.normal(k2, (C, C_hid), dtype=jnp.float32) * (1.0 / jnp.sqrt(C_hid))

    ref = channel_attention_ref(x, w1, w2)

    # Force a small HW tile -> multi-step streaming reduction + mask path.
    out = channel_attention(x, w1, w2, hw_tile=128)
    out = jax.block_until_ready(out)
    assert out.shape == (N, C, 1, 1)
    assert jnp.allclose(out, ref, atol=1e-5, rtol=1e-5), "mismatch vs reference (tiled)"

    # Default auto-tiling path (single HW step for this small shape).
    out2 = jax.block_until_ready(channel_attention(x, w1, w2))
    assert jnp.allclose(out2, ref, atol=1e-5, rtol=1e-5), "mismatch vs reference (auto)"

    print("KERNEL_OK")
</pallas_src>

<mosaic_0001>
module attributes {stable_mosaic.version = 11 : i64} {
  func.func @_channel_attention_kernel(%arg0: i32, %arg1: i32, %arg2: memref<2x32x128xf32, #tpu.memory_space<vmem>>, %arg3: memref<32x2xf32, #tpu.memory_space<vmem>>, %arg4: memref<2x32xf32, #tpu.memory_space<vmem>>, %arg5: memref<2x32xf32, #tpu.memory_space<vmem>>, %arg6: memref<2x32x128xf32, #tpu.memory_space<vmem>>, %arg7: memref<2x32x128xf32, #tpu.memory_space<vmem>>) attributes {dimension_semantics = [#tpu.dimension_semantics<parallel>, #tpu.dimension_semantics<arbitrary>], iteration_bounds = array<i64: 1, 3>, scalar_prefetch = 0 : i64, scratch_operands = 2 : i64, tpu.core_type = #tpu.core_type<tc>, window_params = [{transform_indices = @transform_0, window_bounds = array<i64: 2, 32, 128>}, {pipeline_mode = #tpu.pipeline_mode<synchronous>, transform_indices = @transform_1, window_bounds = array<i64: 32, 2>}, {pipeline_mode = #tpu.pipeline_mode<synchronous>, transform_indices = @transform_2, window_bounds = array<i64: 2, 32>}, {transform_indices = @transform_3, window_bounds = array<i64: 2, 32>}]} {
    %c0_i32 = arith.constant 0 : i32
    %0 = arith.cmpi eq, %arg1, %c0_i32 : i32
    %1 = arith.extui %0 : i1 to i32
    %c0_i32_0 = arith.constant 0 : i32
    %2 = arith.cmpi ne, %1, %c0_i32_0 : i32
    scf.if %2 {
      %cst_17 = arith.constant 0.000000e+00 : f32
      %22 = vector.broadcast %cst_17 : f32 to vector<2x32x128xf32>
      %c0_18 = arith.constant 0 : index
      %c0_19 = arith.constant 0 : index
      %c0_20 = arith.constant 0 : index
      %23 = vector.load %arg6[%c0_18, %c0_19, %c0_20] : memref<2x32x128xf32, #tpu.memory_space<vmem>>, vector<2x32x128xf32>
      tpu.vector_store %arg6[%c0_18, %c0_19, %c0_20], %22 {strides = array<i32>} : memref<2x32x128xf32, #tpu.memory_space<vmem>>, vector<2x32x128xf32>,
      %cst_21 = arith.constant 0xFF800000 : f32
      %24 = vector.broadcast %cst_21 : f32 to vector<2x32x128xf32>
      %c0_22 = arith.constant 0 : index
      %c0_23 = arith.constant 0 : index
      %c0_24 = arith.constant 0 : index
      %25 = vector.load %arg7[%c0_22, %c0_23, %c0_24] : memref<2x32x128xf32, #tpu.memory_space<vmem>>, vector<2x32x128xf32>
      tpu.vector_store %arg7[%c0_22, %c0_23, %c0_24], %24 {strides = array<i32>} : memref<2x32x128xf32, #tpu.memory_space<vmem>>, vector<2x32x128xf32>,
    } else {
    }
    %c0 = arith.constant 0 : index
    %c0_1 = arith.constant 0 : index
    %c0_2 = arith.constant 0 : index
    %3 = vector.load %arg2[%c0, %c0_1, %c0_2] : memref<2x32x128xf32, #tpu.memory_space<vmem>>, vector<2x32x128xf32>
    %c0_3 = arith.constant 0 : index
    %c0_4 = arith.constant 0 : index
    %c0_5 = arith.constant 0 : index
    %4 = vector.load %arg6[%c0_3, %c0_4, %c0_5] : memref<2x32x128xf32, #tpu.memory_space<vmem>>, vector<2x32x128xf32>
    %c0_6 = arith.constant 0 : index
    %c0_7 = arith.constant 0 : index
    %c0_8 = arith.constant 0 : index
    %5 = vector.load %arg7[%c0_6, %c0_7, %c0_8] : memref<2x32x128xf32, #tpu.memory_space<vmem>>, vector<2x32x128xf32>
    %6 = arith.addf %4, %3 : vector<2x32x128xf32>
    %c128_i32 = arith.constant 128 : i32
    %7 = arith.muli %arg1, %c128_i32 : i32
    %c0_i32_9 = arith.constant 0 : i32
    %8 = arith.addi %7, %c0_i32_9 : i32
    %9 = tpu.iota {dimensions = array<i32: 2>} : vector<2x32x128xi32>
    %10 = vector.broadcast %8 : i32 to vector<2x32x128xi32>
    %11 = arith.addi %10, %9 : vector<2x32x128xi32>
    %c324_i32 = arith.constant 324 : i32
    %12 = vector.broadcast %c324_i32 : i32 to vector<2x32x128xi32>
    %13 = arith.cmpi slt, %11, %12 : vector<2x32x128xi32>
    %cst = arith.constant 0xFF800000 : f32
    %14 = vector.broadcast %cst : f32 to vector<2x32x128xf32>
    %15 = arith.select %13, %3, %14 : vector<2x32x128xi1>, vector<2x32x128xf32>
    %16 = arith.maximumf %5, %15 : vector<2x32x128xf32>
    %c0_10 = arith.constant 0 : index
    %c0_11 = arith.constant 0 : index
    %c0_12 = arith.constant 0 : index
    %17 = vector.load %arg6[%c0_10, %c0_11, %c0_12] : memref<2x32x128xf32, #tpu.memory_space<vmem>>, vector<2x32x128xf32>
    tpu.vector_store %arg6[%c0_10, %c0_11, %c0_12], %6 {strides = array<i32>} : memref<2x32x128xf32, #tpu.memory_space<vmem>>, vector<2x32x128xf32>,
    %c0_13 = arith.constant 0 : index
    %c0_14 = arith.constant 0 : index
    %c0_15 = arith.constant 0 : index
    %18 = vector.load %arg7[%c0_13, %c0_14, %c0_15] : memref<2x32x128xf32, #tpu.memory_space<vmem>>, vector<2x32x128xf32>
    tpu.vector_store %arg7[%c0_13, %c0_14, %c0_15], %16 {strides = array<i32>} : memref<2x32x128xf32, #tpu.memory_space<vmem>>, vector<2x32x128xf32>,
    %c2_i32 = arith.constant 2 : i32
    %19 = arith.cmpi eq, %arg1, %c2_i32 : i32
    %20 = arith.extui %19 : i1 to i32
    %c0_i32_16 = arith.constant 0 : i32
    %21 = arith.cmpi ne, %20, %c0_i32_16 : i32
    scf.if %21 {
      %c0_17 = arith.constant 0 : index
      %c0_18 = arith.constant 0 : index
      %c0_19 = arith.constant 0 : index
      %22 = vector.load %arg6[%c0_17, %c0_18, %c0_19] : memref<2x32x128xf32, #tpu.memory_space<vmem>>, vector<2x32x128xf32>
      %cst_20 = arith.constant dense<0.000000e+00> : vector<2x32xf32>
      %23 = vector.multi_reduction <add>, %22, %cst_20 [2] : vector<2x32x128xf32> to vector<2x32xf32>
      %cst_21 = arith.constant 0.00308641978 : f32
      %24 = vector.broadcast %cst_21 : f32 to vector<2x32xf32>
      %25 = arith.mulf %23, %24 : vector<2x32xf32>
      %c0_22 = arith.constant 0 : index
      %c0_23 = arith.constant 0 : index
      %c0_24 = arith.constant 0 : index
      %26 = vector.load %arg7[%c0_22, %c0_23, %c0_24] : memref<2x32x128xf32, #tpu.memory_space<vmem>>, vector<2x32x128xf32>
      %cst_25 = arith.constant dense<0xFF800000> : vector<2x32xf32>
      %27 = vector.multi_reduction <maximumf>, %26, %cst_25 [2] : vector<2x32x128xf32> to vector<2x32xf32>
      %28 = tpu.concatenate %25, %27 in 0 : vector<2x32xf32>, vector<2x32xf32> -> vector<4x32xf32>
      %c0_26 = arith.constant 0 : index
      %c0_27 = arith.constant 0 : index
      %29 = vector.load %arg3[%c0_26, %c0_27] : memref<32x2xf32, #tpu.memory_space<vmem>>, vector<32x2xf32>
      %cst_28 = arith.constant dense<0.000000e+00> : vector<4x2xf32>
      %30 = tpu.matmul %28, %29, %cst_28 {dimension_numbers = #tpu.dot_dimension_numbers<[1], [0], [0], [1], [0, 0, 1, 1], [], []>} : vector<4x32xf32>, vector<32x2xf32>, vector<4x2xf32> -> vector<4x2xf32>
      %cst_29 = arith.constant 0.000000e+00 : f32
      %31 = vector.broadcast %cst_29 : f32 to vector<4x2xf32>
      %32 = arith.maximumf %30, %31 : vector<4x2xf32>
      %c0_30 = arith.constant 0 : index
      %c0_31 = arith.constant 0 : index
      %33 = vector.load %arg4[%c0_30, %c0_31] : memref<2x32xf32, #tpu.memory_space<vmem>>, vector<2x32xf32>
      %cst_32 = arith.constant dense<0.000000e+00> : vector<4x32xf32>
      %34 = tpu.matmul %32, %33, %cst_32 {dimension_numbers = #tpu.dot_dimension_numbers<[1], [0], [0], [1], [0, 0, 1, 1], [], []>} : vector<4x2xf32>, vector<2x32xf32>, vector<4x32xf32> -> vector<4x32xf32>
      %35 = vector.extract_strided_slice %34 {offsets = [0, 0], sizes = [2, 32], strides = [1, 1]} : vector<4x32xf32> to vector<2x32xf32>
      %36 = vector.extract_strided_slice %34 {offsets = [2, 0], sizes = [2, 32], strides = [1, 1]} : vector<4x32xf32> to vector<2x32xf32>
      %37 = arith.addf %35, %36 : vector<2x32xf32>
      %cst_33 = arith.constant 0.000000e+00 : f32
      %38 = vector.broadcast %cst_33 : f32 to vector<2x32xf32>
      %39 = arith.subf %38, %37 : vector<2x32xf32>
      %40 = math.exp %39 : vector<2x32xf32>
      %cst_34 = arith.constant 1.000000e+00 : f32
      %41 = vector.broadcast %cst_34 : f32 to vector<2x32xf32>
      %42 = arith.addf %41, %40 : vector<2x32xf32>
      %cst_35 = arith.constant 1.000000e+00 : f32
      %43 = vector.broadcast %cst_35 : f32 to vector<2x32xf32>
      %44 = arith.divf %43, %42 : vector<2x32xf32>
      %c0_36 = arith.constant 0 : index
      %c0_37 = arith.constant 0 : index
      %45 = vector.load %arg5[%c0_36, %c0_37] : memref<2x32xf32, #tpu.memory_space<vmem>>, vector<2x32xf32>
      tpu.vector_store %arg5[%c0_36, %c0_37], %44 {strides = array<i32>} : memref<2x32xf32, #tpu.memory_space<vmem>>, vector<2x32xf32>,
    } else {
    }
    return
  }
  func.func @transform_0(%arg0: i32, %arg1: i32) -> (i32, i32, i32) {
    %c0_i32 = arith.constant 0 : i32
    %c0_i32_0 = arith.constant 0 : i32
    return %arg0, %c0_i32, %arg1 : i32, i32, i32
  }
  func.func @transform_1(%arg0: i32, %arg1: i32) -> (i32, i32) {
    %c0_i32 = arith.constant 0 : i32
    %c0_i32_0 = arith.constant 0 : i32
    %c0_i32_1 = arith.constant 0 : i32
    return %c0_i32, %c0_i32_0 : i32, i32
  }
  func.func @transform_2(%arg0: i32, %arg1: i32) -> (i32, i32) {
    %c0_i32 = arith.constant 0 : i32
    %c0_i32_0 = arith.constant 0 : i32
    %c0_i32_1 = arith.constant 0 : i32
    return %c0_i32, %c0_i32_0 : i32, i32
  }
  func.func @transform_3(%arg0: i32, %arg1: i32) -> (i32, i32) {
    %c0_i32 = arith.constant 0 : i32
    %c0_i32_0 = arith.constant 0 : i32
    return %arg0, %c0_i32 : i32, i32
  }
}

</mosaic_0001>

<bundles_post_ra>
// kernel: tpu_custom_call.1
= control target key start
LH: loop header
LB: loop body
LE: loop exit
PB: predicated region body
PF: predicated region fallthrough
CT: control target
= control target key end

     0   :  { %8 = vsyncpa [#allocation5], 0  ;;  %s1166_s0 = inlined_call_operand.hbm [shape: f32[2,32,384], index: 0, kind: input, shape index: {}]   ;;  %s1167_s1 = inlined_call_operand.vmem [shape: f32[32,2], index: 1, kind: input, shape index: {}]   ;;  %s1168_s2 = inlined_call_operand.vmem [shape: f32[2,32], index: 2, kind: input, shape index: {}]   ;;  %s1169_s3 = inlined_call_operand.hbm [shape: f32[2,32], index: 3, kind: output, shape index: {}]  }
   0x1   :  { %10 = vsyncpa [#allocation5 + $0x1], 0 }
   0x2   :  { %11 = vsyncpa [#allocation6], 0  ;;  %s958_s12 = smov 0   ;;  %s960_s13 = smov 0  }
   0x3   :  { %s962_s14 = smov 0   ;;  %s964_s15 = smov 0  }
   0x4   :  { %s966_s16 = smov 0   ;;  %s968_s17 = smov 0  }
   0x5 LB: > { %s696_s18 = sadd.s32 4294967295, %s926_s17   ;;  %s26_s19 = sadd.s32 1, %s922_s16  ;;  %s926_s17 = sphi %s968_s17, %s17_s17   ;;  %s922_s16 = sphi %s966_s16, %s1179_s16   ;;  %s918_s15 = sphi %s964_s15, %s1178_s15   ;;  %s914_s14 = sphi %s962_s14, %s1177_s14   ;;  %s910_s13 = sphi %s960_s13, %s1176_s13   ;;  %s906_s12 = sphi %s958_s12, %s1175_s12  }
   0x6   : > { %p27_p0 = scmp.ge.s32.totalorder %s26_s19, 3  ;;  %s38_s20 = sadd.s32 1, %s914_s14 }
   0x7   : > { %p45_p1 = scmp.ne.s32.totalorder %s914_s14, %s910_s13  ;;  %p46_p2 = scmp.eq.s32.totalorder %s926_s17, 0 }
   0x8   : > { %s1181_s19 = smov (%p27_p0, %s26_s19), 0  ;;  %p51_p4 = scmp.ne.s32.totalorder %s910_s13, %s906_s12 }
   0x9   : > { %p994_p3 = por %p46_p2, %p45_p1  ;;  %s34_s22 = ssub.s32 %s922_s16, %s1181_s19 }
   0xa   : > { %p52_p5 = scmp.eq.s32.totalorder %s696_s18, 0  ;;  %p36_p6 = scmp.eq.s32.totalorder %s34_s22, 0 }
   0xb   : > { %p752_p8 = scmp.lt.s32.totalorder %s926_s17, 3  ;;  %s149_s25 = sand.u32 1, %s914_s14  }
   0xc   : > { %p1003_p7 = por %p52_p5, %p51_p4  ;;  %s700_s26 = sshll.u32 %s922_s16, 7 }
   0xd   : > { %s1009_s24 = scalar_select %p36_p6, %s914_s14, %s38_s20  }
   0xe   : > { %s699_s27 = sshll.u32 %s149_s25, 6  ;;  %s1016_s30 = scalar_lea.hbm %s1166_s0, %s700_s26 }
   0xf   : > { %s153_s4 = scalar_lea.vmem [#allocation4], %s699_s27  ;;  %p1020_p9 = pnand %p752_p8, %p994_p3 }
  0x10   : > { %s162_s5 = sshll.u32 %s153_s4, 4  ;;  %s1027_s7 = scalar_lea.sflag [#allocation5], %s149_s25  ;;  %s1024_s5 = int_to_ptr.vmem [resolvable:$true] %s162_s5 }
  0x11   : > { %s816_s8 = scalar_lea.hbm %s1016_s30, 1024  ;;  %p818_p12 = pneg %p1020_p9 }
  0x12   : > { %p817_p11 = scmp.ne.s32.totalorder %s1016_s30, %s816_s8  ;;  %s821_s11 = scalar_lea.hbm %s1166_s0, 3072 }
  0x13   : > { %p822_p1 = scmp.lt.u32.totalorder %s1016_s30, %s1166_s0  ;;  %p823_p2 = scmp.lt.u32.totalorder %s821_s11, %s816_s8 }
  0x14   : > { %p819_p13 = pnand %p818_p12, %p817_p11  ;;  %p825_p4 = scmp.lt.u32.totalorder %s816_s8, %s1016_s30 }
  0x15   : > { %p824_p3 = por %p823_p2, %p822_p1 }
  0x16   : > { %p820_p0 = pneg %p819_p13 }
  0x17   : > { %p826_p5 = por %p825_p4, %p824_p3 }
  0x19   : > { %p827_p6 = pnand %p826_p5, %p820_p0 }
  0x1b   : > { %830 = shalt.err (!%p827_p6)
}
  0x1c   : > { %s831_s21 = scalar_lea.vmem %s1024_s5, 1024  ;;  %s928_s22 = smov [#allocation4]  }
  0x1d   : > { %p832_p8 = scmp.ne.s32.totalorder %s1024_s5, %s831_s21  ;;  %s836_s25 = sshll.u32 %s928_s22, 4  ;;  %s837_s25 = int_to_ptr.vmem [resolvable:$false] %s836_s25 }
  0x1e   : > { %s838_s26 = scalar_lea.vmem %s837_s25, 2048  ;;  %p839_p10 = scmp.lt.s32.totalorder %s1024_s5, %s837_s25 }
  0x1f   : > { %p834_p11 = pnand %p832_p8, %p818_p12  ;;  %p840_p1 = scmp.lt.s32.totalorder %s838_s26, %s831_s21 }
  0x21   : > { %p835_p13 = pneg %p834_p11  ;;  %p841_p2 = por %p840_p1, %p839_p10 }
  0x23   : > { %p842_p3 = pnand %p841_p2, %p835_p13 }
  0x25   : > { %845 = shalt.err (!%p842_p3)
}
  0x26   : > { %s929_s27 = smov 384   ;;  %s930_s28 = smov 128  }
  0x27   : > { %s931_s29 = smov 8   ;;  %p170_p12 = scmp.lt.s32.totalorder %s926_s17, 4 }
  0x28   : > { %751 = dma.hbm_to_vmem [thread:$0]  (!%p1020_p9), %s1016_s30, 1024, %s1024_s5, %s1027_s7, %s929_s27, %s930_s28, %s931_s29  }
  0x29   : > { %p1173_p0 = scmp.ge.s32.totalorder %s926_s17, 1 }
  0x2b   : > { %p171_p4 = pnand %p1173_p0, %p170_p12 }
  0x2c   : > { %s176_s4 = sand.u32 (!%p171_p4), 1, %s910_s13  }
  0x2d   : > { %174 = sbr.rel (%p171_p4) target bundleno = 736 (0x2e0), region = 32  ;;  %s702_s8 = sshll.u32 (!%p171_p4), %s176_s4, 6 }
  0x2e   : > { %s177_s9 = scalar_lea.sflag (!%p171_p4), [#allocation5], %s176_s4  ;;  %s1059_s10 = scalar_lea.vmem (!%p171_p4), [#allocation4], %s702_s8 }
  0x34   : > { %897 = dma.done.wait (%p1003_p7), %s177_s9, 1024  }
  0x35   : > { %899 = vsyncadd (%p1003_p7), %s177_s9, 4294966272  ;;  %p703_p10 = scmp.ne.s32.totalorder %s918_s15, 0 }
  0x36   : > { %v932_v0 = vmov (!%p703_p10), 0.0   ;;  %v933_v1 = vmov (!%p703_p10), -inf  }
  0x37   : > { %202 = sbr.rel (%p703_p10) target bundleno = 63 (0x3f), region = 40  ;;  %203 = vst [vmem:[#allocation2] sm:$0xff] (!%p703_p10), %v932_v0  ;;  %204 = vst [vmem:[#allocation2 + $0x8] sm:$0xff] (!%p703_p10), %v932_v0 }
  0x38   : > { %205 = vst [vmem:[#allocation2 + $0x10] sm:$0xff] (!%p703_p10), %v932_v0  ;;  %206 = vst [vmem:[#allocation2 + $0x18] sm:$0xff] (!%p703_p10), %v932_v0 }
  0x39   : > { %207 = vst [vmem:[#allocation2 + $0x20] sm:$0xff] (!%p703_p10), %v932_v0  ;;  %208 = vst [vmem:[#allocation2 + $0x28] sm:$0xff] (!%p703_p10), %v932_v0 }
  0x3a   : > { %209 = vst [vmem:[#allocation2 + $0x30] sm:$0xff] (!%p703_p10), %v932_v0  ;;  %210 = vst [vmem:[#allocation2 + $0x38] sm:$0xff] (!%p703_p10), %v932_v0 }
  0x3b   : > { %211 = vst [vmem:[#allocation3] sm:$0xff] (!%p703_p10), %v933_v1  ;;  %212 = vst [vmem:[#allocation3 + $0x8] sm:$0xff] (!%p703_p10), %v933_v1 }
  0x3c   : > { %213 = vst [vmem:[#allocation3 + $0x10] sm:$0xff] (!%p703_p10), %v933_v1  ;;  %214 = vst [vmem:[#allocation3 + $0x18] sm:$0xff] (!%p703_p10), %v933_v1 }
  0x3d   : > { %215 = vst [vmem:[#allocation3 + $0x20] sm:$0xff] (!%p703_p10), %v933_v1  ;;  %216 = vst [vmem:[#allocation3 + $0x28] sm:$0xff] (!%p703_p10), %v933_v1 }
  0x3e   : > { %217 = vst [vmem:[#allocation3 + $0x30] sm:$0xff] %v933_v1  ;;  %218 = vst [vmem:[#allocation3 + $0x38] sm:$0xff] %v933_v1 }
  0x3f PF: > { %v219_v2 = vld [vmem:[%s1059_s10] sm:$0xff]  ;;  %v220_v4 = vld [vmem:[%s1059_s10 + $0x8] sm:$0xff]  ;;  %s704_s23 = sshll.u32 %s918_s15, 7  ;;  %v252_v5 = vlaneseq  ;;  %v221_v8 = vld [vmem:[%s1059_s10 + $0x10] sm:$0xff]  ;;  %p705_p7 = scmp.ne.s32.totalorder %s918_s15, 2 }
  0x40   : > { %v227_v3 = vld [vmem:[#allocation2] sm:$0xff]  ;;  %v228_v7 = vld [vmem:[#allocation2 + $0x8] sm:$0xff]  ;;  %v229_v9 = vld [vmem:[#allocation2 + $0x10] sm:$0xff]  ;;  %v254_v10 = vstv %s704_s23  ;;  %vm935_vm1 = vmmov (!%p705_p7), 0   ;;  %vm366_vm2 = vcmask (!%p705_p7), 130112   ;;  %vm373_vm3 = vcmask (!%p705_p7), 195712  }
  0x41   : > { %v243_v6 = vadd.f32 %v227_v3, %v219_v2  ;;  %v244_v11 = vadd.f32 %v228_v7, %v220_v4  ;;  %v245_v12 = vadd.f32 %v229_v9, %v221_v8  ;;  %v222_v13 = vld [vmem:[%s1059_s10 + $0x18] sm:$0xff]  ;;  %v223_v15 = vld [vmem:[%s1059_s10 + $0x20] sm:$0xff]  ;;  %v1073_v16 = vand.u32 127, %v252_v5  ;;  %v224_v19 = vld [vmem:[%s1059_s10 + $0x28] sm:$0xff] }
  0x42   : > { %v230_v14 = vld [vmem:[#allocation2 + $0x18] sm:$0xff]  ;;  %v231_v18 = vld [vmem:[#allocation2 + $0x20] sm:$0xff]  ;;  %v232_v20 = vld [vmem:[#allocation2 + $0x28] sm:$0xff]  ;;  %vm380_vm4 = vcmask (!%p705_p7), 261312   ;;  %vm401_vm5 = vcmask (!%p705_p7), 1041409   ;;  %vm450_vm6 = vcmask (!%p705_p7), 1043459  }
  0x43   : > { %273 = vst [vmem:[#allocation2] sm:$0xff] %v243_v6  ;;  %v246_v17 = vadd.f32 %v230_v14, %v222_v13  ;;  %274 = vst [vmem:[#allocation2 + $0x8] sm:$0xff] %v244_v11  ;;  %v247_v21 = vadd.f32 %v231_v18, %v223_v15  ;;  %v248_v22 = vadd.f32 %v232_v20, %v224_v19  ;;  %v225_v23 = vld [vmem:[%s1059_s10 + $0x30] sm:$0xff]  ;;  %v226_v25 = vld [vmem:[%s1059_s10 + $0x38] sm:$0xff]  ;;  %v936_v14 = vmov (!%p705_p7), 0.0  }
  0x44   : > { %275 = vst [vmem:[#allocation2 + $0x10] sm:$0xff] %v245_v12  ;;  %v233_v24 = vld [vmem:[#allocation2 + $0x30] sm:$0xff]  ;;  %v255_v26 = vadd.s32 %v254_v10, %v1073_v16  ;;  %v234_v28 = vld [vmem:[#allocation2 + $0x38] sm:$0xff]  ;;  %v235_v29 = vld [vmem:[#allocation3] sm:$0xff]  ;;  %v934_v10 = vmov (!%p705_p7), 0.0|0.0   ;;  %728 = vmatprep.mubr.msk.f32.mxu0 (!%p705_p7), %vm935_vm1, %v936_v14  ;;  %731 = vmatprep.subr.mxu1 (!%p705_p7), %v936_v14  ;;  %vm453_vm7 = vcmask (!%p705_p7), 1041408  }
  0x45   : > { %276 = vst [vmem:[#allocation2 + $0x18] sm:$0xff] %v246_v17  ;;  %v249_v27 = vadd.f32 %v233_v24, %v225_v23  ;;  %v236_v30 = vld [vmem:[#allocation3 + $0x8] sm:$0xff]  ;;  %277 = vst [vmem:[#allocation2 + $0x20] sm:$0xff] %v247_v21  ;;  %v250_v31 = vadd.f32 %v234_v28, %v226_v25  ;;  %v237_v32 = vld [vmem:[#allocation3 + $0x10] sm:$0xff]  ;;  %736 = vmatprep.subr.bf16.mxu0 (!%p705_p7), %v934_v10  ;;  %733 = vmatprep.mubr.msk.f32.mxu1 (!%p705_p7), %vm935_vm1, %v936_v14  ;;  %v358_v24 = vshrl.u32 (!%p705_p7), %v252_v5, 7  ;;  %vm459_vm8 = vcmask (!%p705_p7), 261120  }
  0x46   : > { %278 = vst [vmem:[#allocation2 + $0x28] sm:$0xff] %v248_v22  ;;  %vm256_vm0 = vcmp.lt.s32.totalorder %v255_v26, 324  ;;  %v238_v33 = vld [vmem:[#allocation3 + $0x18] sm:$0xff]  ;;  %v239_v34 = vld [vmem:[#allocation3 + $0x20] sm:$0xff]  ;;  %v240_v39 = vld [vmem:[#allocation3 + $0x28] sm:$0xff]  ;;  %v368_v26 = vadd.s32 (!%p705_p7), 4294967280, %v1073_v16 }
  0x47   : > { %279 = vst [vmem:[#allocation2 + $0x30] sm:$0xff] %v249_v27  ;;  %v257_v35 = vsel %vm256_vm0, %v219_v2, -inf  ;;  %v258_v36 = vsel %vm256_vm0, %v220_v4, -inf  ;;  %v259_v37 = vsel %vm256_vm0, %v221_v8, -inf  ;;  %v260_v38 = vsel %vm256_vm0, %v222_v13, -inf  ;;  %v241_v40 = vld [vmem:[#allocation3 + $0x30] sm:$0xff] }
  0x48   : > { %280 = vst [vmem:[#allocation2 + $0x38] sm:$0xff] %v250_v31  ;;  %v265_v41 = vmax.f32 %v235_v29, %v257_v35  ;;  %v266_v42 = vmax.f32 %v236_v30, %v258_v36  ;;  %v267_v43 = vmax.f32 %v237_v32, %v259_v37  ;;  %v268_v44 = vmax.f32 %v238_v33, %v260_v38  ;;  %v242_v45 = vld [vmem:[#allocation3 + $0x38] sm:$0xff]  ;;  %292 = sbr.rel (%p705_p7) target bundleno = 711 (0x2c7), region = 44  ;;  %v455_v7 = vld [vmem:[%s1167_s1] sm:$0xff] (!%p705_p7)  ;;  %v456_v8 = vld [vmem:[%s1167_s1 + $0x8] sm:$0xff] (!%p705_p7) }
  0x49   : > { %v261_v46 = vsel %vm256_vm0, %v223_v15, -inf  ;;  %v262_v47 = vsel %vm256_vm0, %v224_v19, -inf  ;;  %v263_v48 = vsel %vm256_vm0, %v225_v23, -inf  ;;  %v264_v49 = vsel %vm256_vm0, %v226_v25, -inf  ;;  %v457_v11 = vld [vmem:[%s1167_s1 + $0x10] sm:$0xff] (!%p705_p7)  ;;  %v458_v12 = vld [vmem:[%s1167_s1 + $0x18] sm:$0xff] (!%p705_p7) }
  0x4a   : > { %281 = vst [vmem:[#allocation3] sm:$0xff] %v265_v41  ;;  %282 = vst [vmem:[#allocation3 + $0x8] sm:$0xff] %v266_v42  ;;  %v269_v50 = vmax.f32 %v239_v34, %v261_v46  ;;  %v270_v51 = vmax.f32 %v240_v39, %v262_v47  ;;  %v271_v52 = vmax.f32 %v241_v40, %v263_v48  ;;  %v293_v55 = vld [vmem:[#allocation2] sm:$0xff] (!%p705_p7)  ;;  %v294_v57 = vld [vmem:[#allocation2 + $0x8] sm:$0xff] (!%p705_p7)  ;;  %v361_v25 = vadd.s32 (!%p705_p7), 4294967288, %v1073_v16 }
  0x4b   : > { %283 = vst [vmem:[#allocation3 + $0x10] sm:$0xff] %v267_v43  ;;  %284 = vst [vmem:[#allocation3 + $0x18] sm:$0xff] %v268_v44  ;;  %v272_v53 = vmax.f32 %v242_v45, %v264_v49  ;;  %301 = vadd.xlane.f32.xlu0 (!%p705_p7), %v293_v55  ;;  %v295_v59 = vld [vmem:[#allocation2 + $0x10] sm:$0xff] (!%p705_p7)  ;;  %v737_v9 = vpack.c.bf16 (!%p705_p7), %v456_v8, %v455_v7  ;;  %v740_v13 = vpack.c.bf16 (!%p705_p7), %v458_v12, %v457_v11  ;;  %v534_v14 = vld [vmem:[%s1168_s2] sm:$0x3] (!%p705_p7)  ;;  %vm535_vm9 = vcmask (!%p705_p7), 15360  }
  0x4c   : > { %285 = vst [vmem:[#allocation3 + $0x20] sm:$0xff] %v269_v50  ;;  %286 = vst [vmem:[#allocation3 + $0x28] sm:$0xff] %v270_v51  ;;  %v297_v54 = vld [vmem:[#allocation2 + $0x20] sm:$0xff] (!%p705_p7)  ;;  %v296_v61 = vld [vmem:[#allocation2 + $0x18] sm:$0xff] (!%p705_p7)  ;;  %v375_v27 = vadd.s32 (!%p705_p7), 4294967272, %v1073_v16  ;;  %v359_v30 = vsub.s32 (!%p705_p7), %v1073_v16, %v358_v24  ;;  %v364_v31 = vsub.s32 (!%p705_p7), %v361_v25, %v358_v24  ;;  %v371_v35 = vsub.s32 (!%p705_p7), %v368_v26, %v358_v24 }
  0x4d   : > { %287 = vst [vmem:[#allocation3 + $0x30] sm:$0xff] %v271_v52  ;;  %288 = vst [vmem:[#allocation3 + $0x38] sm:$0xff] %v272_v53  ;;  %309 = vadd.xlane.f32.xlu1 (!%p705_p7), %v297_v54  ;;  %v298_v56 = vld [vmem:[#allocation2 + $0x28] sm:$0xff] (!%p705_p7)  ;;  %738 = vmatpush3.bf16.msra.mxu0 (!%p705_p7), %v737_v9  ;;  %vm622_vm10 = vcmask (!%p705_p7), 254976  }
  0x4e   : > { %v299_v58 = vld [vmem:[#allocation2 + $0x30] sm:$0xff] (!%p705_p7)  ;;  %739 = vmatprep.subr.bf16.mxu0 (!%p705_p7), %v934_v10  ;;  %v378_v39 = vsub.s32 (!%p705_p7), %v375_v27, %v358_v24  ;;  %732 = vmatpush3.msk.msra.mxu1 (!%p705_p7), %vm453_vm7, %v534_v14 }
  0x4f   : > { %303 = vadd.xlane.f32.xlu0 %v294_v57  ;;  %v300_v60 = vld [vmem:[#allocation2 + $0x38] sm:$0xff] }
  0x51   : > { %311 = vadd.xlane.f32.xlu1 %v298_v56  ;;  %v326_v62 = vld [vmem:[#allocation3 + $0x8] sm:$0xff]  ;;  %v325_v63 = vld [vmem:[#allocation3] sm:$0xff]  ;;  %741 = vmatpush3.bf16.msra.mxu0 %v740_v13 }
  0x52   : > { %v327_v3 = vld [vmem:[#allocation3 + $0x10] sm:$0xff]  ;;  %v328_v6 = vld [vmem:[#allocation3 + $0x18] sm:$0xff] }
  0x53   : > { %305 = vadd.xlane.f32.xlu0 %v295_v59  ;;  %v330_v0 = vld [vmem:[#allocation3 + $0x28] sm:$0xff]  ;;  %v329_v1 = vld [vmem:[#allocation3 + $0x20] sm:$0xff] }
  0x54   : > { %v331_v2 = vld [vmem:[#allocation3 + $0x30] sm:$0xff]  ;;  %v332_v4 = vld [vmem:[#allocation3 + $0x38] sm:$0xff] }
  0x55   : > { %313 = vadd.xlane.f32.xlu1 %v299_v58 }
  0x57   : > { %307 = vadd.xlane.f32.xlu0 %v296_v61 }
  0x59   : > { %315 = vadd.xlane.f32.xlu1 %v300_v60 }
  0x5b   : > { %333 = vmax.xlane.f32.xlu0 %v325_v63 }
  0x5d   : > { %335 = vmax.xlane.f32.xlu1 %v326_v62 }
  0x5f   : > { %341 = vmax.xlane.f32.xlu0 %v329_v1 }
  0x61   : > { %343 = vmax.xlane.f32.xlu1 %v330_v0 }
  0x63   : > { %337 = vmax.xlane.f32.xlu0 %v327_v3 }
  0x65   : > { %345 = vmax.xlane.f32.xlu1 %v331_v2 }
  0x67   : > { %339 = vmax.xlane.f32.xlu0 %v328_v6 }
  0x69   : > { %347 = vmax.xlane.f32.xlu1 %v332_v4 }
  0xd8   : > { %v302_v17 = vpop.xlane.xlu0 %301 }
  0xd9   : > { %v317_v38 = vmul.f32 0.0030864198, %v302_v17 }
  0xda   : > { %v310_v15 = vpop.xlane.xlu1 %309 }
  0xdb   : > { %v321_v34 = vmul.f32 0.0030864198, %v310_v15  ;;  %v360_v47 = vrot.slane %v317_v38, %v359_v30 }
  0xdc   : > { %v304_v19 = vpop.xlane.xlu0 %303 }
  0xdd   : > { %v318_v33 = vmul.f32 0.0030864198, %v304_v19  ;;  %v385_v16 = vrot.slane %v321_v34, %v359_v30 }
  0xde   : > { %v312_v18 = vpop.xlane.xlu1 %311 }
  0xdf   : > { %v322_v32 = vmul.f32 0.0030864198, %v312_v18  ;;  %v365_v44 = vrot.slane %v318_v33, %v364_v31 }
  0xe0   : > { %v306_v21 = vpop.xlane.xlu0 %305 }
  0xe1   : > { %v319_v37 = vmul.f32 0.0030864198, %v306_v21  ;;  %v389_v43 = vrot.slane %v322_v32, %v364_v31  ;;  %v367_v57 = vsel %vm366_vm2, %v365_v44, %v360_v47 }
  0xe2   : > { %v314_v20 = vpop.xlane.xlu1 %313 }
  0xe3   : > { %v323_v36 = vmul.f32 0.0030864198, %v314_v20  ;;  %v372_v46 = vrot.slane %v319_v37, %v371_v35  ;;  %v390_v56 = vsel %vm366_vm2, %v389_v43, %v385_v16 }
  0xe4   : > { %v308_v23 = vpop.xlane.xlu0 %307 }
  0xe5   : > { %v320_v40 = vmul.f32 0.0030864198, %v308_v23  ;;  %v394_v45 = vrot.slane %v323_v36, %v371_v35  ;;  %v374_v61 = vsel %vm373_vm3, %v372_v46, %v367_v57 }
  0xe6   : > { %v316_v22 = vpop.xlane.xlu1 %315 }
  0xe7   : > { %v324_v5 = vmul.f32 0.0030864198, %v316_v22  ;;  %v379_v49 = vrot.slane %v320_v40, %v378_v39  ;;  %v395_v60 = vsel %vm373_vm3, %v394_v45, %v390_v56 }
  0xe8   : > { %v334_v29 = vpop.xlane.xlu0 %333 }
  0xe9   : > { %v399_v48 = vrot.slane %v324_v5, %v378_v39  ;;  %v415_v53 = vrot.slane %v334_v29, %v359_v30  ;;  %v381_v63 = vsel %vm380_vm4, %v379_v49, %v374_v61 }
  0xea   : > { %v336_v28 = vpop.xlane.xlu1 %335 }
  0xeb   : > { %v419_v52 = vrot.slane %v336_v28, %v364_v31  ;;  %v400_v62 = vsel %vm380_vm4, %v399_v48, %v395_v60 }
  0xec   : > { %v342_v42 = vpop.xlane.xlu0 %341  ;;  %v402_v11 = vsel %vm401_vm5, %v400_v62, %v381_v63 }
  0xed   : > { %v434_v55 = vrot.slane %v342_v42, %v359_v30  ;;  %v420_v2 = vsel %vm366_vm2, %v419_v52, %v415_v53 }
  0xee   : > { %v344_v41 = vpop.xlane.xlu1 %343 }
  0xef   : > { %v438_v54 = vrot.slane %v344_v41, %v364_v31 }
  0xf0   : > { %v338_v51 = vpop.xlane.xlu0 %337 }
  0xf1   : > { %v424_v59 = vrot.slane %v338_v51, %v371_v35  ;;  %v439_v3 = vsel %vm366_vm2, %v438_v54, %v434_v55 }
  0xf2   : > { %v346_v50 = vpop.xlane.xlu1 %345 }
  0xf3   : > { %v443_v58 = vrot.slane %v346_v50, %v371_v35  ;;  %v425_v8 = vsel %vm373_vm3, %v424_v59, %v420_v2 }
  0xf4   : > { %v340_v1 = vpop.xlane.xlu0 %339 }
  0xf5   : > { %v429_v6 = vrot.slane %v340_v1, %v378_v39  ;;  %v444_v7 = vsel %vm373_vm3, %v443_v58, %v439_v3 }
  0xf6   : > { %v348_v0 = vpop.xlane.xlu1 %347 }
  0xf7   : > { %v448_v4 = vrot.slane %v348_v0, %v378_v39  ;;  %v430_v10 = vsel %vm380_vm4, %v429_v6, %v425_v8 }
  0xf9   : > { %v449_v9 = vsel %vm380_vm4, %v448_v4, %v444_v7 }
  0xfa   : > { %v451_v12 = vsel %vm450_vm6, %v449_v9, %v430_v10 }
  0xfb   : > { %v454_v13 = vsel %vm453_vm7, %v402_v11, %v451_v12 }
  0xfc   : > { %729 = vmatmul.mubr.msk.f32.vlgmr.msra.gmra.mrb[0].mxu0 %vm459_vm8, %v454_v13 }
 0x1cf   : > { %v529_v15 = vpop.f32.mrb[0].mxu0 }
 0x1d0   : > { %v533_v17 = vmax.f32 %v529_v15, 0.0  ;;  %v730_v18 = vpop.f32.mrb[1].mxu0 }
 0x1d2   : > { %734 = vmatmul.mubr.msk.f32.vlgmr.msra.gmra.mrb[0].mxu1 %vm535_vm9, %v533_v17 }
 0x2a5   : > { %v608_v19 = vpop.f32.mrb[0].mxu1 }
 0x2a6   : > { %v613_v20 = vrot.slane %v608_v19, 2  ;;  %v735_v21 = vpop.f32.mrb[1].mxu1 }
 0x2a8   : > { %v615_v22 = vadd.f32 %v613_v20, %v608_v19 }
 0x2aa   : > { %v616_v23 = vsub.f32 0.0, %v615_v22 }
 0x2ac   : > { %v617_v24 = vmul.f32 1.442695, %v616_v23 }
 0x2ae   : > { %812 = vpow2.f32 %v617_v24 }
 0x2b8   : > { %v813_v25 = vpop.eup %812 }
 0x2b9   : > { %v619_v26 = vadd.f32 1.0, %v813_v25 }
 0x2bb   : > { %814 = vrcp.f32 %v619_v26 }
 0x2c5   : > { %v815_v27 = vpop.eup %814 }
 0x2c6   : > { %623 = vst.msk [vmem:[#allocation7] sm:$0x3] %vm622_vm10, %v815_v27 }
 0x2c7 PF: > { %p1122_p9 = scmp.eq.s32.totalorder %s696_s18, 2  ;;  %s937_s26 = smov [#allocation7]  }
 0x2c8   : > { %s633_s27 = sshll.u32 %s937_s26, 4  ;;  %s634_s27 = int_to_ptr.vmem [resolvable:$true] %s633_s27 }
 0x2c9   : > { %s846_s28 = scalar_lea.vmem %s634_s27, 32  ;;  %p853_p11 = scmp.lt.s32.totalorder %s634_s27, %s634_s27 }
 0x2ca   : > { %p847_p5 = scmp.ne.s32.totalorder %s634_s27, %s846_s28  ;;  %p854_p13 = scmp.lt.s32.totalorder %s846_s28, %s846_s28 }
 0x2cc   : > { %p848_p6 = pnand %p847_p5, %p1122_p9  ;;  %p855_p1 = por %p854_p13, %p853_p11 }
 0x2ce   : > { %p849_p8 = pneg %p848_p6 }
 0x2d0   : > { %p856_p2 = pnand %p855_p1, %p849_p8 }
 0x2d2   : > { %859 = shalt.err (!%p856_p2)
}
 0x2d3   : > { %s860_s18 = scalar_lea.hbm %s1169_s3, 32 }
 0x2d4   : > { %p861_p3 = scmp.ne.s32.totalorder %s1169_s3, %s860_s18  ;;  %p866_p4 = scmp.lt.u32.totalorder %s860_s18, %s1169_s3 }
 0x2d6   : > { %p862_p12 = pnand %p861_p3, %p1122_p9 }
 0x2d8   : > { %p863_p0 = pneg %p862_p12 }
 0x2da   : > { %p868_p10 = pnand %p866_p4, %p863_p0 }
 0x2dc   : > { %871 = shalt.err (!%p868_p10)
}
 0x2dd   : > { %745 = dma.vmem_to_hbm [thread:$0]  (%p1122_p9), %s634_s27, 32, %s1169_s3, [#allocation6]  }
 0x2de   : > { %901 = dma.done.wait (%p1122_p9), [#allocation6], 32  }
 0x2df   : > { %903 = vsyncadd (%p1122_p9), [#allocation6], 4294967264 }
 0x2e0 PF: > { %s17_s17 = sadd.s32 1, %s926_s17   ;;  %s1175_s12 = smov %s910_s13 }
 0x2e1   : > { %p14_p7 = scmp.ge.s32.totalorder %s17_s17, 5   ;;  %s1176_s13 = smov %s914_s14 }
 0x2e2   : > { %s1177_s14 = smov %s1009_s24  ;;  %s1178_s15 = smov %s922_s16 }
 0x2e3   : > { %s1179_s16 = smov %s1181_s19  ;;  %16 = sbr.rel (!%p14_p7) target bundleno = 5 (0x5), region = 78 }
 0x2ea   :  { %646 = vsyncpa [#allocation5], 1 }
 0x2eb   :  { %648 = vsyncpa [#allocation5 + $0x1], 1 }
 0x2ec   :  { %649 = vsyncpa [#allocation6], 1 }
 0x2ed   :  { %651 = vsyncpa [#allocation6 + $0x1], 1 }

</bundles_post_ra>
